<compile_context>
chip_gen: v5e
topology: v5e:2x2
jax: 0.10.0
libtpu: 0.0.40
codegen_flags: <defaults>
</compile_context>

<pallas_src>
import jax
import jax.numpy as jnp
from jax.experimental import pallas as pl
from jax.experimental.pallas import tpu as pltpu


def _seq_conv_kernel(x_ref, w_ref, o_ref):
    # x_ref: (1, seq, Cin, HWb)   -- one batch group, full sequence, one HW tile
    # w_ref: (3, Cout, Cin)       -- temporal taps k = 0, 1, 2  (x[t-1], x[t], x[t+1])
    # o_ref: (1, seq, Cout, HWb)
    seq = x_ref.shape[1]
    w_prev = w_ref[0]   # (Cout, Cin) applied to x[t-1]
    w_curr = w_ref[1]   # (Cout, Cin) applied to x[t]
    w_next = w_ref[2]   # (Cout, Cin) applied to x[t+1]

    # Static unrolled loop over the (compile-time) sequence length. Boundary taps are simply
    # skipped, which implements the Conv3d zero padding without materializing a padded tensor.
    for t in range(seq):
        acc = jnp.dot(w_curr, x_ref[0, t], preferred_element_type=jnp.float32)
        if t > 0:
            acc = acc + jnp.dot(w_prev, x_ref[0, t - 1], preferred_element_type=jnp.float32)
        if t < seq - 1:
            acc = acc + jnp.dot(w_next, x_ref[0, t + 1], preferred_element_type=jnp.float32)
        o_ref[0, t] = acc.astype(o_ref.dtype)


def _pick_hw_block(hw, seq, cin, cout, itemsize, budget_bytes=8 * 1024 * 1024):
    """Largest HW tile (multiple of 128, dividing hw) whose double-buffered in+out blocks
    fit a conservative VMEM budget (safe under default scoped limits on v5e/v6e/v7x)."""
    if hw % 128 != 0:
        # Block shape must equal the full dim if it is not 128-aligned.
        return hw
    per_hw_bytes = 2 * seq * (cin + cout) * itemsize  # in + out blocks, double-buffered
    max_blk = max(128, (budget_bytes // per_hw_bytes) // 128 * 128)
    blk = min(hw, max_blk)
    while hw % blk != 0:
        blk -= 128
    return blk


def seq_expand_conv(x, weight, seq_length):
    """x: (B*seq, Cin, H, W) NCHW; weight: (Cout, Cin, 3, 1, 1) (PyTorch Conv3d layout)."""
    total, cin, h, w = x.shape
    assert total % seq_length == 0
    b = total // seq_length
    cout = weight.shape[0]
    hw = h * w

    # Pure reshape (no data movement): (B*seq, Cin, H, W) -> (B, seq, Cin, HW).
    x_l = x.reshape(b, seq_length, cin, hw)
    # Weight: (Cout, Cin, 3, 1, 1) -> (3, Cout, Cin); tiny, one-time.
    w_k = weight[:, :, :, 0, 0].transpose(2, 0, 1)

    hw_block = _pick_hw_block(hw, seq_length, cin, cout, x.dtype.itemsize)
    n_hw = hw // hw_block if hw % hw_block == 0 else 1
    if hw % hw_block != 0:
        hw_block = hw

    grid = (b, n_hw)
    out = pl.pallas_call(
        _seq_conv_kernel,
        out_shape=jax.ShapeDtypeStruct((b, seq_length, cout, hw), x.dtype),
        grid_spec=pltpu.PrefetchScalarGridSpec(
            num_scalar_prefetch=0,
            grid=grid,
            in_specs=[
                # One block per (batch group, HW tile): whole sequence, all input channels.
                pl.BlockSpec((1, seq_length, cin, hw_block), lambda bi, hi: (bi, 0, 0, hi)),
                # Full weight, resident across the grid.
                pl.BlockSpec((3, cout, cin), lambda bi, hi: (0, 0, 0)),
            ],
            out_specs=pl.BlockSpec((1, seq_length, cout, hw_block),
                                   lambda bi, hi: (bi, 0, 0, hi)),
        ),
        compiler_params=pltpu.CompilerParams(
            dimension_semantics=("parallel", "parallel")),
    )(x_l, w_k)

    # Pure reshape back to NCHW: (B, seq, Cout, HW) -> (B*seq, Cout, H, W).
    return out.reshape(b * seq_length, cout, h, w)


def seq_expand_conv_ref(x, weight, seq_length):
    """Plain-JAX reference reproducing the PyTorch forward."""
    total, cin, h, w = x.shape
    b = total // seq_length
    cout = weight.shape[0]
    xs = x.reshape(b, seq_length, cin, h, w)
    xs_pad = jnp.pad(xs, ((0, 0), (1, 1), (0, 0), (0, 0), (0, 0)))
    wk = weight[:, :, :, 0, 0]  # (Cout, Cin, 3)
    out = jnp.zeros((b, seq_length, cout, h, w), dtype=jnp.float32)
    for k in range(3):
        out = out + jnp.einsum("btihw,oi->btohw",
                               xs_pad[:, k:k + seq_length].astype(jnp.float32),
                               wk[:, :, k].astype(jnp.float32))
    return out.reshape(b * seq_length, cout, h, w).astype(x.dtype)


if __name__ == "__main__":
    seq_length = 8
    b_groups = 2
    batch = b_groups * seq_length          # 16
    in_channels = 4
    out_channels = 8
    height = width = 16

    key = jax.random.PRNGKey(0)
    kx, kw = jax.random.split(key)
    x = jax.random.normal(kx, (batch, in_channels, height, width), dtype=jnp.float32)
    # Deterministic synthetic Conv3d weight, PyTorch layout (Cout, Cin, 3, 1, 1), no bias.
    weight = jax.random.normal(kw, (out_channels, in_channels, 3, 1, 1),
                               dtype=jnp.float32) * 0.1

    y = seq_expand_conv(x, weight, seq_length)
    y = jax.block_until_ready(y)

    y_ref = seq_expand_conv_ref(x, weight, seq_length)
    assert y.shape == (batch, out_channels, height, width)
    assert jnp.allclose(y, y_ref, atol=1e-5, rtol=1e-5), "mismatch vs reference"

    print("KERNEL_OK")
</pallas_src>

<mosaic_0001>
module attributes {stable_mosaic.version = 11 : i64} {
  func.func @_seq_conv_kernel(%arg0: i32, %arg1: i32, %arg2: memref<1x8x4x256xf32, #tpu.memory_space<vmem>>, %arg3: memref<3x8x4xf32, #tpu.memory_space<vmem>>, %arg4: memref<1x8x8x256xf32, #tpu.memory_space<vmem>>) attributes {dimension_semantics = [#tpu.dimension_semantics<parallel>, #tpu.dimension_semantics<parallel>], iteration_bounds = array<i64: 2, 1>, scalar_prefetch = 0 : i64, scratch_operands = 0 : i64, tpu.core_type = #tpu.core_type<tc>, window_params = [{transform_indices = @transform_0, window_bounds = array<i64: 1, 8, 4, 256>}, {pipeline_mode = #tpu.pipeline_mode<synchronous>, transform_indices = @transform_1, window_bounds = array<i64: 3, 8, 4>}, {transform_indices = @transform_2, window_bounds = array<i64: 1, 8, 8, 256>}]} {
    %c0 = arith.constant 0 : index
    %c0_0 = arith.constant 0 : index
    %c0_1 = arith.constant 0 : index
    %0 = vector.load %arg3[%c0, %c0_0, %c0_1] : memref<3x8x4xf32, #tpu.memory_space<vmem>>, vector<1x8x4xf32>
    %1 = vector.shape_cast %0 : vector<1x8x4xf32> to vector<8x4xf32>
    %c1 = arith.constant 1 : index
    %c0_2 = arith.constant 0 : index
    %c0_3 = arith.constant 0 : index
    %2 = vector.load %arg3[%c1, %c0_2, %c0_3] : memref<3x8x4xf32, #tpu.memory_space<vmem>>, vector<1x8x4xf32>
    %3 = vector.shape_cast %2 : vector<1x8x4xf32> to vector<8x4xf32>
    %c2 = arith.constant 2 : index
    %c0_4 = arith.constant 0 : index
    %c0_5 = arith.constant 0 : index
    %4 = vector.load %arg3[%c2, %c0_4, %c0_5] : memref<3x8x4xf32, #tpu.memory_space<vmem>>, vector<1x8x4xf32>
    %5 = vector.shape_cast %4 : vector<1x8x4xf32> to vector<8x4xf32>
    %c0_6 = arith.constant 0 : index
    %c0_7 = arith.constant 0 : index
    %c0_8 = arith.constant 0 : index
    %c0_9 = arith.constant 0 : index
    %6 = vector.load %arg2[%c0_6, %c0_7, %c0_8, %c0_9] : memref<1x8x4x256xf32, #tpu.memory_space<vmem>>, vector<1x1x4x256xf32>
    %7 = vector.shape_cast %6 : vector<1x1x4x256xf32> to vector<4x256xf32>
    %cst = arith.constant dense<0.000000e+00> : vector<8x256xf32>
    %8 = tpu.matmul %3, %7, %cst {dimension_numbers = #tpu.dot_dimension_numbers<[1], [0], [0], [1], [0, 0, 1, 1], [], []>} : vector<8x4xf32>, vector<4x256xf32>, vector<8x256xf32> -> vector<8x256xf32>
    %c0_10 = arith.constant 0 : index
    %c1_11 = arith.constant 1 : index
    %c0_12 = arith.constant 0 : index
    %c0_13 = arith.constant 0 : index
    %9 = vector.load %arg2[%c0_10, %c1_11, %c0_12, %c0_13] : memref<1x8x4x256xf32, #tpu.memory_space<vmem>>, vector<1x1x4x256xf32>
    %10 = vector.shape_cast %9 : vector<1x1x4x256xf32> to vector<4x256xf32>
    %cst_14 = arith.constant dense<0.000000e+00> : vector<8x256xf32>
    %11 = tpu.matmul %5, %10, %cst_14 {dimension_numbers = #tpu.dot_dimension_numbers<[1], [0], [0], [1], [0, 0, 1, 1], [], []>} : vector<8x4xf32>, vector<4x256xf32>, vector<8x256xf32> -> vector<8x256xf32>
    %12 = arith.addf %8, %11 : vector<8x256xf32>
    %c0_15 = arith.constant 0 : index
    %c0_16 = arith.constant 0 : index
    %c0_17 = arith.constant 0 : index
    %c0_18 = arith.constant 0 : index
    %13 = vector.load %arg4[%c0_15, %c0_16, %c0_17, %c0_18] : memref<1x8x8x256xf32, #tpu.memory_space<vmem>>, vector<1x1x8x256xf32>
    %14 = vector.shape_cast %13 : vector<1x1x8x256xf32> to vector<8x256xf32>
    %15 = vector.shape_cast %12 : vector<8x256xf32> to vector<1x1x8x256xf32>
    tpu.vector_store %arg4[%c0_15, %c0_16, %c0_17, %c0_18], %15 {strides = array<i32>} : memref<1x8x8x256xf32, #tpu.memory_space<vmem>>, vector<1x1x8x256xf32>,
    %c0_19 = arith.constant 0 : index
    %c1_20 = arith.constant 1 : index
    %c0_21 = arith.constant 0 : index
    %c0_22 = arith.constant 0 : index
    %16 = vector.load %arg2[%c0_19, %c1_20, %c0_21, %c0_22] : memref<1x8x4x256xf32, #tpu.memory_space<vmem>>, vector<1x1x4x256xf32>
    %17 = vector.shape_cast %16 : vector<1x1x4x256xf32> to vector<4x256xf32>
    %cst_23 = arith.constant dense<0.000000e+00> : vector<8x256xf32>
    %18 = tpu.matmul %3, %17, %cst_23 {dimension_numbers = #tpu.dot_dimension_numbers<[1], [0], [0], [1], [0, 0, 1, 1], [], []>} : vector<8x4xf32>, vector<4x256xf32>, vector<8x256xf32> -> vector<8x256xf32>
    %c0_24 = arith.constant 0 : index
    %c0_25 = arith.constant 0 : index
    %c0_26 = arith.constant 0 : index
    %c0_27 = arith.constant 0 : index
    %19 = vector.load %arg2[%c0_24, %c0_25, %c0_26, %c0_27] : memref<1x8x4x256xf32, #tpu.memory_space<vmem>>, vector<1x1x4x256xf32>
    %20 = vector.shape_cast %19 : vector<1x1x4x256xf32> to vector<4x256xf32>
    %cst_28 = arith.constant dense<0.000000e+00> : vector<8x256xf32>
    %21 = tpu.matmul %1, %20, %cst_28 {dimension_numbers = #tpu.dot_dimension_numbers<[1], [0], [0], [1], [0, 0, 1, 1], [], []>} : vector<8x4xf32>, vector<4x256xf32>, vector<8x256xf32> -> vector<8x256xf32>
    %22 = arith.addf %18, %21 : vector<8x256xf32>
    %c0_29 = arith.constant 0 : index
    %c2_30 = arith.constant 2 : index
    %c0_31 = arith.constant 0 : index
    %c0_32 = arith.constant 0 : index
    %23 = vector.load %arg2[%c0_29, %c2_30, %c0_31, %c0_32] : memref<1x8x4x256xf32, #tpu.memory_space<vmem>>, vector<1x1x4x256xf32>
    %24 = vector.shape_cast %23 : vector<1x1x4x256xf32> to vector<4x256xf32>
    %cst_33 = arith.constant dense<0.000000e+00> : vector<8x256xf32>
    %25 = tpu.matmul %5, %24, %cst_33 {dimension_numbers = #tpu.dot_dimension_numbers<[1], [0], [0], [1], [0, 0, 1, 1], [], []>} : vector<8x4xf32>, vector<4x256xf32>, vector<8x256xf32> -> vector<8x256xf32>
    %26 = arith.addf %22, %25 : vector<8x256xf32>
    %c0_34 = arith.constant 0 : index
    %c1_35 = arith.constant 1 : index
    %c0_36 = arith.constant 0 : index
    %c0_37 = arith.constant 0 : index
    %27 = vector.load %arg4[%c0_34, %c1_35, %c0_36, %c0_37] : memref<1x8x8x256xf32, #tpu.memory_space<vmem>>, vector<1x1x8x256xf32>
    %28 = vector.shape_cast %27 : vector<1x1x8x256xf32> to vector<8x256xf32>
    %29 = vector.shape_cast %26 : vector<8x256xf32> to vector<1x1x8x256xf32>
    tpu.vector_store %arg4[%c0_34, %c1_35, %c0_36, %c0_37], %29 {strides = array<i32>} : memref<1x8x8x256xf32, #tpu.memory_space<vmem>>, vector<1x1x8x256xf32>,
    %c0_38 = arith.constant 0 : index
    %c2_39 = arith.constant 2 : index
    %c0_40 = arith.constant 0 : index
    %c0_41 = arith.constant 0 : index
    %30 = vector.load %arg2[%c0_38, %c2_39, %c0_40, %c0_41] : memref<1x8x4x256xf32, #tpu.memory_space<vmem>>, vector<1x1x4x256xf32>
    %31 = vector.shape_cast %30 : vector<1x1x4x256xf32> to vector<4x256xf32>
    %cst_42 = arith.constant dense<0.000000e+00> : vector<8x256xf32>
    %32 = tpu.matmul %3, %31, %cst_42 {dimension_numbers = #tpu.dot_dimension_numbers<[1], [0], [0], [1], [0, 0, 1, 1], [], []>} : vector<8x4xf32>, vector<4x256xf32>, vector<8x256xf32> -> vector<8x256xf32>
    %c0_43 = arith.constant 0 : index
    %c1_44 = arith.constant 1 : index
    %c0_45 = arith.constant 0 : index
    %c0_46 = arith.constant 0 : index
    %33 = vector.load %arg2[%c0_43, %c1_44, %c0_45, %c0_46] : memref<1x8x4x256xf32, #tpu.memory_space<vmem>>, vector<1x1x4x256xf32>
    %34 = vector.shape_cast %33 : vector<1x1x4x256xf32> to vector<4x256xf32>
    %cst_47 = arith.constant dense<0.000000e+00> : vector<8x256xf32>
    %35 = tpu.matmul %1, %34, %cst_47 {dimension_numbers = #tpu.dot_dimension_numbers<[1], [0], [0], [1], [0, 0, 1, 1], [], []>} : vector<8x4xf32>, vector<4x256xf32>, vector<8x256xf32> -> vector<8x256xf32>
    %36 = arith.addf %32, %35 : vector<8x256xf32>
    %c0_48 = arith.constant 0 : index
    %c3 = arith.constant 3 : index
    %c0_49 = arith.constant 0 : index
    %c0_50 = arith.constant 0 : index
    %37 = vector.load %arg2[%c0_48, %c3, %c0_49, %c0_50] : memref<1x8x4x256xf32, #tpu.memory_space<vmem>>, vector<1x1x4x256xf32>
    %38 = vector.shape_cast %37 : vector<1x1x4x256xf32> to vector<4x256xf32>
    %cst_51 = arith.constant dense<0.000000e+00> : vector<8x256xf32>
    %39 = tpu.matmul %5, %38, %cst_51 {dimension_numbers = #tpu.dot_dimension_numbers<[1], [0], [0], [1], [0, 0, 1, 1], [], []>} : vector<8x4xf32>, vector<4x256xf32>, vector<8x256xf32> -> vector<8x256xf32>
    %40 = arith.addf %36, %39 : vector<8x256xf32>
    %c0_52 = arith.constant 0 : index
    %c2_53 = arith.constant 2 : index
    %c0_54 = arith.constant 0 : index
    %c0_55 = arith.constant 0 : index
    %41 = vector.load %arg4[%c0_52, %c2_53, %c0_54, %c0_55] : memref<1x8x8x256xf32, #tpu.memory_space<vmem>>, vector<1x1x8x256xf32>
    %42 = vector.shape_cast %41 : vector<1x1x8x256xf32> to vector<8x256xf32>
    %43 = vector.shape_cast %40 : vector<8x256xf32> to vector<1x1x8x256xf32>
    tpu.vector_store %arg4[%c0_52, %c2_53, %c0_54, %c0_55], %43 {strides = array<i32>} : memref<1x8x8x256xf32, #tpu.memory_space<vmem>>, vector<1x1x8x256xf32>,
    %c0_56 = arith.constant 0 : index
    %c3_57 = arith.constant 3 : index
    %c0_58 = arith.constant 0 : index
    %c0_59 = arith.constant 0 : index
    %44 = vector.load %arg2[%c0_56, %c3_57, %c0_58, %c0_59] : memref<1x8x4x256xf32, #tpu.memory_space<vmem>>, vector<1x1x4x256xf32>
    %45 = vector.shape_cast %44 : vector<1x1x4x256xf32> to vector<4x256xf32>
    %cst_60 = arith.constant dense<0.000000e+00> : vector<8x256xf32>
    %46 = tpu.matmul %3, %45, %cst_60 {dimension_numbers = #tpu.dot_dimension_numbers<[1], [0], [0], [1], [0, 0, 1, 1], [], []>} : vector<8x4xf32>, vector<4x256xf32>, vector<8x256xf32> -> vector<8x256xf32>
    %c0_61 = arith.constant 0 : index
    %c2_62 = arith.constant 2 : index
    %c0_63 = arith.constant 0 : index
    %c0_64 = arith.constant 0 : index
    %47 = vector.load %arg2[%c0_61, %c2_62, %c0_63, %c0_64] : memref<1x8x4x256xf32, #tpu.memory_space<vmem>>, vector<1x1x4x256xf32>
    %48 = vector.shape_cast %47 : vector<1x1x4x256xf32> to vector<4x256xf32>
    %cst_65 = arith.constant dense<0.000000e+00> : vector<8x256xf32>
    %49 = tpu.matmul %1, %48, %cst_65 {dimension_numbers = #tpu.dot_dimension_numbers<[1], [0], [0], [1], [0, 0, 1, 1], [], []>} : vector<8x4xf32>, vector<4x256xf32>, vector<8x256xf32> -> vector<8x256xf32>
    %50 = arith.addf %46, %49 : vector<8x256xf32>
    %c0_66 = arith.constant 0 : index
    %c4 = arith.constant 4 : index
    %c0_67 = arith.constant 0 : index
    %c0_68 = arith.constant 0 : index
    %51 = vector.load %arg2[%c0_66, %c4, %c0_67, %c0_68] : memref<1x8x4x256xf32, #tpu.memory_space<vmem>>, vector<1x1x4x256xf32>
    %52 = vector.shape_cast %51 : vector<1x1x4x256xf32> to vector<4x256xf32>
    %cst_69 = arith.constant dense<0.000000e+00> : vector<8x256xf32>
    %53 = tpu.matmul %5, %52, %cst_69 {dimension_numbers = #tpu.dot_dimension_numbers<[1], [0], [0], [1], [0, 0, 1, 1], [], []>} : vector<8x4xf32>, vector<4x256xf32>, vector<8x256xf32> -> vector<8x256xf32>
    %54 = arith.addf %50, %53 : vector<8x256xf32>
    %c0_70 = arith.constant 0 : index
    %c3_71 = arith.constant 3 : index
    %c0_72 = arith.constant 0 : index
    %c0_73 = arith.constant 0 : index
    %55 = vector.load %arg4[%c0_70, %c3_71, %c0_72, %c0_73] : memref<1x8x8x256xf32, #tpu.memory_space<vmem>>, vector<1x1x8x256xf32>
    %56 = vector.shape_cast %55 : vector<1x1x8x256xf32> to vector<8x256xf32>
    %57 = vector.shape_cast %54 : vector<8x256xf32> to vector<1x1x8x256xf32>
    tpu.vector_store %arg4[%c0_70, %c3_71, %c0_72, %c0_73], %57 {strides = array<i32>} : memref<1x8x8x256xf32, #tpu.memory_space<vmem>>, vector<1x1x8x256xf32>,
    %c0_74 = arith.constant 0 : index
    %c4_75 = arith.constant 4 : index
    %c0_76 = arith.constant 0 : index
    %c0_77 = arith.constant 0 : index
    %58 = vector.load %arg2[%c0_74, %c4_75, %c0_76, %c0_77] : memref<1x8x4x256xf32, #tpu.memory_space<vmem>>, vector<1x1x4x256xf32>
    %59 = vector.shape_cast %58 : vector<1x1x4x256xf32> to vector<4x256xf32>
    %cst_78 = arith.constant dense<0.000000e+00> : vector<8x256xf32>
    %60 = tpu.matmul %3, %59, %cst_78 {dimension_numbers = #tpu.dot_dimension_numbers<[1], [0], [0], [1], [0, 0, 1, 1], [], []>} : vector<8x4xf32>, vector<4x256xf32>, vector<8x256xf32> -> vector<8x256xf32>
    %c0_79 = arith.constant 0 : index
    %c3_80 = arith.constant 3 : index
    %c0_81 = arith.constant 0 : index
    %c0_82 = arith.constant 0 : index
    %61 = vector.load %arg2[%c0_79, %c3_80, %c0_81, %c0_82] : memref<1x8x4x256xf32, #tpu.memory_space<vmem>>, vector<1x1x4x256xf32>
    %62 = vector.shape_cast %61 : vector<1x1x4x256xf32> to vector<4x256xf32>
    %cst_83 = arith.constant dense<0.000000e+00> : vector<8x256xf32>
    %63 = tpu.matmul %1, %62, %cst_83 {dimension_numbers = #tpu.dot_dimension_numbers<[1], [0], [0], [1], [0, 0, 1, 1], [], []>} : vector<8x4xf32>, vector<4x256xf32>, vector<8x256xf32> -> vector<8x256xf32>
    %64 = arith.addf %60, %63 : vector<8x256xf32>
    %c0_84 = arith.constant 0 : index
    %c5 = arith.constant 5 : index
    %c0_85 = arith.constant 0 : index
    %c0_86 = arith.constant 0 : index
    %65 = vector.load %arg2[%c0_84, %c5, %c0_85, %c0_86] : memref<1x8x4x256xf32, #tpu.memory_space<vmem>>, vector<1x1x4x256xf32>
    %66 = vector.shape_cast %65 : vector<1x1x4x256xf32> to vector<4x256xf32>
    %cst_87 = arith.constant dense<0.000000e+00> : vector<8x256xf32>
    %67 = tpu.matmul %5, %66, %cst_87 {dimension_numbers = #tpu.dot_dimension_numbers<[1], [0], [0], [1], [0, 0, 1, 1], [], []>} : vector<8x4xf32>, vector<4x256xf32>, vector<8x256xf32> -> vector<8x256xf32>
    %68 = arith.addf %64, %67 : vector<8x256xf32>
    %c0_88 = arith.constant 0 : index
    %c4_89 = arith.constant 4 : index
    %c0_90 = arith.constant 0 : index
    %c0_91 = arith.constant 0 : index
    %69 = vector.load %arg4[%c0_88, %c4_89, %c0_90, %c0_91] : memref<1x8x8x256xf32, #tpu.memory_space<vmem>>, vector<1x1x8x256xf32>
    %70 = vector.shape_cast %69 : vector<1x1x8x256xf32> to vector<8x256xf32>
    %71 = vector.shape_cast %68 : vector<8x256xf32> to vector<1x1x8x256xf32>
    tpu.vector_store %arg4[%c0_88, %c4_89, %c0_90, %c0_91], %71 {strides = array<i32>} : memref<1x8x8x256xf32, #tpu.memory_space<vmem>>, vector<1x1x8x256xf32>,
    %c0_92 = arith.constant 0 : index
    %c5_93 = arith.constant 5 : index
    %c0_94 = arith.constant 0 : index
    %c0_95 = arith.constant 0 : index
    %72 = vector.load %arg2[%c0_92, %c5_93, %c0_94, %c0_95] : memref<1x8x4x256xf32, #tpu.memory_space<vmem>>, vector<1x1x4x256xf32>
    %73 = vector.shape_cast %72 : vector<1x1x4x256xf32> to vector<4x256xf32>
    %cst_96 = arith.constant dense<0.000000e+00> : vector<8x256xf32>
    %74 = tpu.matmul %3, %73, %cst_96 {dimension_numbers = #tpu.dot_dimension_numbers<[1], [0], [0], [1], [0, 0, 1, 1], [], []>} : vector<8x4xf32>, vector<4x256xf32>, vector<8x256xf32> -> vector<8x256xf32>
    %c0_97 = arith.constant 0 : index
    %c4_98 = arith.constant 4 : index
    %c0_99 = arith.constant 0 : index
    %c0_100 = arith.constant 0 : index
    %75 = vector.load %arg2[%c0_97, %c4_98, %c0_99, %c0_100] : memref<1x8x4x256xf32, #tpu.memory_space<vmem>>, vector<1x1x4x256xf32>
    %76 = vector.shape_cast %75 : vector<1x1x4x256xf32> to vector<4x256xf32>
    %cst_101 = arith.constant dense<0.000000e+00> : vector<8x256xf32>
    %77 = tpu.matmul %1, %76, %cst_101 {dimension_numbers = #tpu.dot_dimension_numbers<[1], [0], [0], [1], [0, 0, 1, 1], [], []>} : vector<8x4xf32>, vector<4x256xf32>, vector<8x256xf32> -> vector<8x256xf32>
    %78 = arith.addf %74, %77 : vector<8x256xf32>
    %c0_102 = arith.constant 0 : index
    %c6 = arith.constant 6 : index
    %c0_103 = arith.constant 0 : index
    %c0_104 = arith.constant 0 : index
    %79 = vector.load %arg2[%c0_102, %c6, %c0_103, %c0_104] : memref<1x8x4x256xf32, #tpu.memory_space<vmem>>, vector<1x1x4x256xf32>
    %80 = vector.shape_cast %79 : vector<1x1x4x256xf32> to vector<4x256xf32>
    %cst_105 = arith.constant dense<0.000000e+00> : vector<8x256xf32>
    %81 = tpu.matmul %5, %80, %cst_105 {dimension_numbers = #tpu.dot_dimension_numbers<[1], [0], [0], [1], [0, 0, 1, 1], [], []>} : vector<8x4xf32>, vector<4x256xf32>, vector<8x256xf32> -> vector<8x256xf32>
    %82 = arith.addf %78, %81 : vector<8x256xf32>
    %c0_106 = arith.constant 0 : index
    %c5_107 = arith.constant 5 : index
    %c0_108 = arith.constant 0 : index
    %c0_109 = arith.constant 0 : index
    %83 = vector.load %arg4[%c0_106, %c5_107, %c0_108, %c0_109] : memref<1x8x8x256xf32, #tpu.memory_space<vmem>>, vector<1x1x8x256xf32>
    %84 = vector.shape_cast %83 : vector<1x1x8x256xf32> to vector<8x256xf32>
    %85 = vector.shape_cast %82 : vector<8x256xf32> to vector<1x1x8x256xf32>
    tpu.vector_store %arg4[%c0_106, %c5_107, %c0_108, %c0_109], %85 {strides = array<i32>} : memref<1x8x8x256xf32, #tpu.memory_space<vmem>>, vector<1x1x8x256xf32>,
    %c0_110 = arith.constant 0 : index
    %c6_111 = arith.constant 6 : index
    %c0_112 = arith.constant 0 : index
    %c0_113 = arith.constant 0 : index
    %86 = vector.load %arg2[%c0_110, %c6_111, %c0_112, %c0_113] : memref<1x8x4x256xf32, #tpu.memory_space<vmem>>, vector<1x1x4x256xf32>
    %87 = vector.shape_cast %86 : vector<1x1x4x256xf32> to vector<4x256xf32>
    %cst_114 = arith.constant dense<0.000000e+00> : vector<8x256xf32>
    %88 = tpu.matmul %3, %87, %cst_114 {dimension_numbers = #tpu.dot_dimension_numbers<[1], [0], [0], [1], [0, 0, 1, 1], [], []>} : vector<8x4xf32>, vector<4x256xf32>, vector<8x256xf32> -> vector<8x256xf32>
    %c0_115 = arith.constant 0 : index
    %c5_116 = arith.constant 5 : index
    %c0_117 = arith.constant 0 : index
    %c0_118 = arith.constant 0 : index
    %89 = vector.load %arg2[%c0_115, %c5_116, %c0_117, %c0_118] : memref<1x8x4x256xf32, #tpu.memory_space<vmem>>, vector<1x1x4x256xf32>
    %90 = vector.shape_cast %89 : vector<1x1x4x256xf32> to vector<4x256xf32>
    %cst_119 = arith.constant dense<0.000000e+00> : vector<8x256xf32>
    %91 = tpu.matmul %1, %90, %cst_119 {dimension_numbers = #tpu.dot_dimension_numbers<[1], [0], [0], [1], [0, 0, 1, 1], [], []>} : vector<8x4xf32>, vector<4x256xf32>, vector<8x256xf32> -> vector<8x256xf32>
    %92 = arith.addf %88, %91 : vector<8x256xf32>
    %c0_120 = arith.constant 0 : index
    %c7 = arith.constant 7 : index
    %c0_121 = arith.constant 0 : index
    %c0_122 = arith.constant 0 : index
    %93 = vector.load %arg2[%c0_120, %c7, %c0_121, %c0_122] : memref<1x8x4x256xf32, #tpu.memory_space<vmem>>, vector<1x1x4x256xf32>
    %94 = vector.shape_cast %93 : vector<1x1x4x256xf32> to vector<4x256xf32>
    %cst_123 = arith.constant dense<0.000000e+00> : vector<8x256xf32>
    %95 = tpu.matmul %5, %94, %cst_123 {dimension_numbers = #tpu.dot_dimension_numbers<[1], [0], [0], [1], [0, 0, 1, 1], [], []>} : vector<8x4xf32>, vector<4x256xf32>, vector<8x256xf32> -> vector<8x256xf32>
    %96 = arith.addf %92, %95 : vector<8x256xf32>
    %c0_124 = arith.constant 0 : index
    %c6_125 = arith.constant 6 : index
    %c0_126 = arith.constant 0 : index
    %c0_127 = arith.constant 0 : index
    %97 = vector.load %arg4[%c0_124, %c6_125, %c0_126, %c0_127] : memref<1x8x8x256xf32, #tpu.memory_space<vmem>>, vector<1x1x8x256xf32>
    %98 = vector.shape_cast %97 : vector<1x1x8x256xf32> to vector<8x256xf32>
    %99 = vector.shape_cast %96 : vector<8x256xf32> to vector<1x1x8x256xf32>
    tpu.vector_store %arg4[%c0_124, %c6_125, %c0_126, %c0_127], %99 {strides = array<i32>} : memref<1x8x8x256xf32, #tpu.memory_space<vmem>>, vector<1x1x8x256xf32>,
    %c0_128 = arith.constant 0 : index
    %c7_129 = arith.constant 7 : index
    %c0_130 = arith.constant 0 : index
    %c0_131 = arith.constant 0 : index
    %100 = vector.load %arg2[%c0_128, %c7_129, %c0_130, %c0_131] : memref<1x8x4x256xf32, #tpu.memory_space<vmem>>, vector<1x1x4x256xf32>
    %101 = vector.shape_cast %100 : vector<1x1x4x256xf32> to vector<4x256xf32>
    %cst_132 = arith.constant dense<0.000000e+00> : vector<8x256xf32>
    %102 = tpu.matmul %3, %101, %cst_132 {dimension_numbers = #tpu.dot_dimension_numbers<[1], [0], [0], [1], [0, 0, 1, 1], [], []>} : vector<8x4xf32>, vector<4x256xf32>, vector<8x256xf32> -> vector<8x256xf32>
    %c0_133 = arith.constant 0 : index
    %c6_134 = arith.constant 6 : index
    %c0_135 = arith.constant 0 : index
    %c0_136 = arith.constant 0 : index
    %103 = vector.load %arg2[%c0_133, %c6_134, %c0_135, %c0_136] : memref<1x8x4x256xf32, #tpu.memory_space<vmem>>, vector<1x1x4x256xf32>
    %104 = vector.shape_cast %103 : vector<1x1x4x256xf32> to vector<4x256xf32>
    %cst_137 = arith.constant dense<0.000000e+00> : vector<8x256xf32>
    %105 = tpu.matmul %1, %104, %cst_137 {dimension_numbers = #tpu.dot_dimension_numbers<[1], [0], [0], [1], [0, 0, 1, 1], [], []>} : vector<8x4xf32>, vector<4x256xf32>, vector<8x256xf32> -> vector<8x256xf32>
    %106 = arith.addf %102, %105 : vector<8x256xf32>
    %c0_138 = arith.constant 0 : index
    %c7_139 = arith.constant 7 : index
    %c0_140 = arith.constant 0 : index
    %c0_141 = arith.constant 0 : index
    %107 = vector.load %arg4[%c0_138, %c7_139, %c0_140, %c0_141] : memref<1x8x8x256xf32, #tpu.memory_space<vmem>>, vector<1x1x8x256xf32>
    %108 = vector.shape_cast %107 : vector<1x1x8x256xf32> to vector<8x256xf32>
    %109 = vector.shape_cast %106 : vector<8x256xf32> to vector<1x1x8x256xf32>
    tpu.vector_store %arg4[%c0_138, %c7_139, %c0_140, %c0_141], %109 {strides = array<i32>} : memref<1x8x8x256xf32, #tpu.memory_space<vmem>>, vector<1x1x8x256xf32>,
    return
  }
  func.func @transform_0(%arg0: i32, %arg1: i32) -> (i32, i32, i32, i32) {
    %c0_i32 = arith.constant 0 : i32
    %c0_i32_0 = arith.constant 0 : i32
    %c0_i32_1 = arith.constant 0 : i32
    return %arg0, %c0_i32, %c0_i32_0, %arg1 : i32, i32, i32, i32
  }
  func.func @transform_1(%arg0: i32, %arg1: i32) -> (i32, i32, i32) {
    %c0_i32 = arith.constant 0 : i32
    %c0_i32_0 = arith.constant 0 : i32
    %c0_i32_1 = arith.constant 0 : i32
    %c0_i32_2 = arith.constant 0 : i32
    return %c0_i32, %c0_i32_0, %c0_i32_1 : i32, i32, i32
  }
  func.func @transform_2(%arg0: i32, %arg1: i32) -> (i32, i32, i32, i32) {
    %c0_i32 = arith.constant 0 : i32
    %c0_i32_0 = arith.constant 0 : i32
    %c0_i32_1 = arith.constant 0 : i32
    return %arg0, %c0_i32, %c0_i32_0, %arg1 : i32, i32, i32, i32
  }
}

</mosaic_0001>

<bundles_post_ra>
// kernel: tpu_custom_call.1
= control target key start
LH: loop header
LB: loop body
LE: loop exit
PB: predicated region body
PF: predicated region fallthrough
CT: control target
= control target key end

     0   :  { %7 = vsyncpa [#allocation3], 0  ;;  %s2062_s0 = inlined_call_operand.hbm [shape: f32[2,8,4,256], index: 0, kind: input, shape index: {}]   ;;  %s2063_s1 = inlined_call_operand.vmem [shape: f32[3,8,4], index: 1, kind: input, shape index: {}]   ;;  %s2064_s2 = inlined_call_operand.hbm [shape: f32[2,8,8,256], index: 2, kind: output, shape index: {}]  }
   0x1   :  { %9 = vsyncpa [#allocation3 + $0x1], 0 }
   0x2   :  { %10 = vsyncpa [#allocation4], 0 }
   0x3   :  { %12 = vsyncpa [#allocation4 + $0x1], 0  ;;  %s1765_s9 = smov 0   ;;  %s1767_s10 = smov 0  }
   0x4   :  { %s1769_s11 = smov 0   ;;  %s1771_s12 = smov 0  }
   0x5   :  { %s1773_s13 = smov 0   ;;  %s1775_s14 = smov 0  }
   0x6 LB: > { %s1425_s15 = sadd.s32 4294967295, %s1744_s14   ;;  %s1426_s16 = sadd.s32 4294967294, %s1744_s14   ;;  %s1744_s14 = sphi %s1775_s14, %s18_s14   ;;  %s1740_s13 = sphi %s1773_s13, %s2073_s13   ;;  %s1736_s12 = sphi %s1771_s12, %s2072_s12   ;;  %s1732_s11 = sphi %s1769_s11, %s2071_s11   ;;  %s1728_s10 = sphi %s1767_s10, %s2070_s10   ;;  %s1724_s9 = sphi %s1765_s9, %s2069_s9  }
   0x7   : > { %s30_s17 = sadd.s32 1, %s1740_s13  ;;  %s39_s18 = sadd.s32 1, %s1732_s11 }
   0x8   : > { %p32_p0 = scmp.ge.s32.totalorder %s30_s17, 2  ;;  %p46_p1 = scmp.ne.s32.totalorder %s1732_s11, %s1728_s10 }
   0x9   : > { %p47_p2 = scmp.eq.s32.totalorder %s1744_s14, 0  ;;  %p52_p3 = scmp.ne.s32.totalorder %s1728_s10, %s1724_s9 }
   0xa   : > { %s2075_s17 = smov (%p32_p0, %s30_s17), 0  ;;  %p53_p5 = scmp.eq.s32.totalorder %s1425_s15, 0 }
   0xb   : > { %p1806_p4 = por %p47_p2, %p46_p1  ;;  %s34_s20 = ssub.s32 %s1740_s13, %s2075_s17 }
   0xc   : > { %p99_p6 = scmp.eq.s32.totalorder %s1425_s15, 1  ;;  %p37_p7 = scmp.eq.s32.totalorder %s34_s20, 0 }
   0xd   : > { %p1812_p8 = por %p53_p5, %p52_p3  ;;  %p105_p10 = scmp.eq.s32.totalorder %s1426_s16, 1 }
   0xe   : > { %p1816_p9 = por %p99_p6, %p46_p1  ;;  %p1428_p12 = scmp.ge.s32.totalorder %s1744_s14, 2 }
   0xf   : > { %s1821_s23 = scalar_select %p37_p7, %s1732_s11, %s39_s18  }
  0x10   : > { %p1823_p11 = por %p105_p10, %p52_p3  ;;  %p1578_p13 = scmp.lt.s32.totalorder %s1744_s14, 2 }
  0x11   : > { %s128_s25 = sand.u32 1, %s1732_s11   ;;  %s1564_s27 = sshll.u32 %s1740_s13, 6 }
  0x12   : > { %s1429_s26 = sshll.u32 %s128_s25, 6  ;;  %s139_s30 = scalar_lea.hbm %s2062_s0, %s1564_s27 }
  0x13   : > { %s132_s3 = scalar_lea.vmem [#allocation2], %s1429_s26  ;;  %s140_s5 = sshll.u32 %s139_s30, 4  ;;  %s141_s5 = int_to_ptr.hbm [resolvable:$true] %s140_s5 }
  0x14   : > { %s142_s4 = sshll.u32 %s132_s3, 4  ;;  %p1571_p0 = pnand %p1578_p13, %p1806_p4  ;;  %s143_s4 = int_to_ptr.vmem [resolvable:$true] %s142_s4 }
  0x15   : > { %p1432_p1 = scmp.ge.s32.totalorder %s1744_s14, 1  ;;  %s129_s6 = scalar_lea.sflag [#allocation3], %s128_s25 }
  0x16   : > { %s1746_s7 = smov 128   ;;  %s1747_s8 = smov 8  }
  0x17   : > { %1573 = dma.hbm_to_vmem [thread:$0]  (!%p1571_p0), %s141_s5, 1024, %s143_s4, %s129_s6, %s1746_s7, %s1746_s7, %s1747_s8  }
  0x18   : > { %p150_p2 = scmp.lt.s32.totalorder %s1744_s14, 3 }
  0x1a   : > { %p151_p3 = pnand %p1432_p1, %p150_p2 }
  0x1b   : > { %s1839_s15 = sand.u32 (!%p151_p3), 1, %s1728_s10  }
  0x1c   : > { %154 = sbr.rel (%p151_p3) target bundleno = 351 (0x15f), region = 28  ;;  %s1433_s16 = sshll.u32 (!%p151_p3), %s1839_s15, 6 }
  0x1d   : > { %s157_s18 = scalar_lea.sflag (!%p151_p3), [#allocation3], %s1839_s15  ;;  %s1843_s20 = scalar_lea.vmem (!%p151_p3), [#allocation2], %s1433_s16 }
  0x21   : > { %1715 = dma.done.wait (%p1812_p8), %s157_s18, 1024  }
  0x22   : > { %1717 = vsyncadd (%p1812_p8), %s157_s18, 4294966272  ;;  %v1437_v0 = vld [vmem:[%s1843_s20 + $0x8] sm:$0xff]  ;;  %v189_v1 = vld [vmem:[%s1843_s20] sm:$0xff]  ;;  %vm200_vm0 = vcmask 1043456   ;;  %vm196_vm1 = vcmask 31744   ;;  %s1434_s29 = sshll.u32 %s1839_s15, 7 }
  0x23   : > { %193 = vst [vmem:[#allocation1] ss:$2 sm:$0xff] %v1437_v0  ;;  %v1854_v2 = vld [vmem:[%s2063_s1 + $0x10] sm:$0xff]  ;;  %v1865_v5 = vld [vmem:[%s2063_s1 + $0x8] sm:$0xff]  ;;  %v1876_v8 = vld [vmem:[%s2063_s1] sm:$0xff]  ;;  %s1981_s30 = scalar_lea.vmem [#allocation5], %s1434_s29 }
  0x24   : > { %v1455_v11 = vld [vmem:[%s1843_s20 + $0x10] sm:$0xff]  ;;  %v1472_v18 = vld [vmem:[%s1843_s20 + $0x18] sm:$0xff]  ;;  %v1489_v25 = vld [vmem:[%s1843_s20 + $0x20] sm:$0xff]  ;;  %s1565_s3 = sshll.u32 %s1736_s12, 7  ;;  %s1335_s7 = sshll.u32 %s1981_s30, 4  ;;  %s1336_s7 = int_to_ptr.vmem [resolvable:$true] %s1335_s7 }
  0x25   : > { %v1506_v32 = vld [vmem:[%s1843_s20 + $0x28] sm:$0xff]  ;;  %v1523_v39 = vld [vmem:[%s1843_s20 + $0x30] sm:$0xff]  ;;  %v1540_v50 = vld [vmem:[%s1843_s20 + $0x38] sm:$0xff]  ;;  %s1334_s6 = scalar_lea.hbm %s2064_s2, %s1565_s3  ;;  %s1321_s16 = scalar_lea.sflag [#allocation4], %s1839_s15 }
  0x26   : > { %s1337_s8 = sshll.u32 %s1334_s6, 4  ;;  %s1682_s25 = scalar_lea.hbm %s2064_s2, 256  ;;  %s1338_s8 = int_to_ptr.hbm [resolvable:$true] %s1337_s8 }
  0x27   : > { %s1676_s18 = sshra.s32 %s1338_s8, 4  ;;  %s1677_s18 = int_to_ptr.hbm [resolvable:$true] %s1676_s18 }
  0x28   : > { %s1678_s12 = scalar_lea.hbm %s1677_s18, 128  ;;  %p1683_p7 = scmp.lt.s32.totalorder %s1677_s18, %s2064_s2 }
  0x29   : > { %p1679_p4 = scmp.ne.s32.totalorder %s1677_s18, %s1678_s12  ;;  %p1684_p8 = scmp.lt.s32.totalorder %s1682_s25, %s1678_s12 }
  0x2a   : > { %v194_v3 = vld.sshfl [vmem:[#allocation1] sm:$0xff pattern:$0x75316420]  ;;  %v195_v4 = vld.sshfl [vmem:[#allocation1 + $0x8] sm:$0xff pattern:$0x75316420] }
  0x2b   : > { %246 = vst [vmem:[#allocation1] ss:$2 sm:$0xff] %v189_v1  ;;  %1438 = vmatpush.msk.msra.mxu0 %vm200_vm0, %v194_v3  ;;  %1440 = vmatpush.msk.msra.mxu1 %vm200_vm0, %v195_v4  ;;  %p1680_p5 = pnand %p1679_p4, %p1816_p9  ;;  %p1685_p10 = por %p1684_p8, %p1683_p7 }
  0x2c   : > { %1439 = vmatmul.msk.f32.vlgmr.msra.gmra.mxu0 %vm196_vm1, %v1854_v2  ;;  %1441 = vmatmul.msk.f32.vlgmr.msra.gmra.mxu1 %vm196_vm1, %v1854_v2 }
  0x2d   : > { %p1681_p6 = pneg %p1680_p5 }
  0x2f   : > { %p1686_p13 = pnand %p1685_p10, %p1681_p6 }
  0x32   : > { %v247_v6 = vld.sshfl [vmem:[#allocation1] sm:$0xff pattern:$0x75316420]  ;;  %v248_v7 = vld.sshfl [vmem:[#allocation1 + $0x8] sm:$0xff pattern:$0x75316420] }
  0x33   : > { %1442 = vmatpush.msk.msra.mxu2 %vm200_vm0, %v247_v6  ;;  %1444 = vmatpush.msk.msra.mxu3 %vm200_vm0, %v248_v7  ;;  %301 = vst [vmem:[#allocation1] ss:$2 sm:$0xff] %v189_v1 }
  0x34   : > { %1443 = vmatmul.msk.f32.vlgmr.msra.gmra.mxu2 %vm196_vm1, %v1865_v5  ;;  %1445 = vmatmul.msk.f32.vlgmr.msra.gmra.mxu3 %vm196_vm1, %v1865_v5 }
  0x3a   : > { %v302_v9 = vld.sshfl [vmem:[#allocation1] sm:$0xff pattern:$0x75316420]  ;;  %v303_v10 = vld.sshfl [vmem:[#allocation1 + $0x8] sm:$0xff pattern:$0x75316420] }
  0x3b   : > { %352 = vst [vmem:[#allocation1] ss:$2 sm:$0xff] %v1437_v0  ;;  %1447 = vmatpush.msk.msrb.mxu0 %vm200_vm0, %v302_v9  ;;  %1449 = vmatpush.msk.msrb.mxu1 %vm200_vm0, %v303_v10 }
  0x3c   : > { %1448 = vmatmul.msk.f32.vlgmr.msrb.gmra.mxu0 %vm196_vm1, %v1876_v8  ;;  %1450 = vmatmul.msk.f32.vlgmr.msrb.gmra.mxu1 %vm196_vm1, %v1876_v8 }
  0x42   : > { %v353_v12 = vld.sshfl [vmem:[#allocation1] sm:$0xff pattern:$0x75316420]  ;;  %v354_v13 = vld.sshfl [vmem:[#allocation1 + $0x8] sm:$0xff pattern:$0x75316420] }
  0x43   : > { %1451 = vmatpush.msk.msrb.mxu2 %vm200_vm0, %v353_v12  ;;  %1453 = vmatpush.msk.msrb.mxu3 %vm200_vm0, %v354_v13  ;;  %402 = vst [vmem:[#allocation1] ss:$2 sm:$0xff] %v1455_v11 }
  0x44   : > { %1452 = vmatmul.msk.f32.vlgmr.msrb.gmra.mxu2 %vm196_vm1, %v1865_v5  ;;  %1454 = vmatmul.msk.f32.vlgmr.msrb.gmra.mxu3 %vm196_vm1, %v1865_v5 }
  0x4a   : > { %v403_v14 = vld.sshfl [vmem:[#allocation1] sm:$0xff pattern:$0x75316420]  ;;  %v404_v15 = vld.sshfl [vmem:[#allocation1 + $0x8] sm:$0xff pattern:$0x75316420] }
  0x4b   : > { %457 = vst [vmem:[#allocation1] ss:$2 sm:$0xff] %v1437_v0  ;;  %1456 = vmatpush.msk.msra.mxu0 %vm200_vm0, %v403_v14  ;;  %1458 = vmatpush.msk.msra.mxu1 %vm200_vm0, %v404_v15 }
  0x4c   : > { %1457 = vmatmul.msk.f32.vlgmr.msra.gmra.mxu0 %vm196_vm1, %v1854_v2  ;;  %1459 = vmatmul.msk.f32.vlgmr.msra.gmra.mxu1 %vm196_vm1, %v1854_v2 }
  0x52   : > { %v458_v16 = vld.sshfl [vmem:[#allocation1] sm:$0xff pattern:$0x75316420]  ;;  %v459_v17 = vld.sshfl [vmem:[#allocation1 + $0x8] sm:$0xff pattern:$0x75316420] }
  0x53   : > { %1464 = vmatpush.msk.msra.mxu2 %vm200_vm0, %v458_v16  ;;  %1466 = vmatpush.msk.msra.mxu3 %vm200_vm0, %v459_v17  ;;  %505 = vst [vmem:[#allocation1] ss:$2 sm:$0xff] %v1455_v11 }
  0x54   : > { %1465 = vmatmul.msk.f32.vlgmr.msra.gmra.mxu2 %vm196_vm1, %v1876_v8  ;;  %1467 = vmatmul.msk.f32.vlgmr.msra.gmra.mxu3 %vm196_vm1, %v1876_v8 }
  0x5a   : > { %v506_v19 = vld.sshfl [vmem:[#allocation1] sm:$0xff pattern:$0x75316420]  ;;  %v507_v20 = vld.sshfl [vmem:[#allocation1 + $0x8] sm:$0xff pattern:$0x75316420] }
  0x5b   : > { %555 = vst [vmem:[#allocation1] ss:$2 sm:$0xff] %v1472_v18  ;;  %1468 = vmatpush.msk.msrb.mxu0 %vm200_vm0, %v506_v19  ;;  %1470 = vmatpush.msk.msrb.mxu1 %vm200_vm0, %v507_v20 }
  0x5c   : > { %1469 = vmatmul.msk.f32.vlgmr.msrb.gmra.mxu0 %vm196_vm1, %v1865_v5  ;;  %1471 = vmatmul.msk.f32.vlgmr.msrb.gmra.mxu1 %vm196_vm1, %v1865_v5 }
  0x62   : > { %v556_v21 = vld.sshfl [vmem:[#allocation1] sm:$0xff pattern:$0x75316420]  ;;  %v557_v22 = vld.sshfl [vmem:[#allocation1 + $0x8] sm:$0xff pattern:$0x75316420] }
  0x63   : > { %1473 = vmatpush.msk.msrb.mxu2 %vm200_vm0, %v556_v21  ;;  %1475 = vmatpush.msk.msrb.mxu3 %vm200_vm0, %v557_v22  ;;  %610 = vst [vmem:[#allocation1] ss:$2 sm:$0xff] %v1455_v11 }
  0x64   : > { %1474 = vmatmul.msk.f32.vlgmr.msrb.gmra.mxu2 %vm196_vm1, %v1854_v2  ;;  %1476 = vmatmul.msk.f32.vlgmr.msrb.gmra.mxu3 %vm196_vm1, %v1854_v2 }
  0x6a   : > { %v611_v23 = vld.sshfl [vmem:[#allocation1] sm:$0xff pattern:$0x75316420]  ;;  %v612_v24 = vld.sshfl [vmem:[#allocation1 + $0x8] sm:$0xff pattern:$0x75316420] }
  0x6b   : > { %658 = vst [vmem:[#allocation1] ss:$2 sm:$0xff] %v1472_v18  ;;  %1481 = vmatpush.msk.msra.mxu0 %vm200_vm0, %v611_v23  ;;  %1483 = vmatpush.msk.msra.mxu1 %vm200_vm0, %v612_v24 }
  0x6c   : > { %1482 = vmatmul.msk.f32.vlgmr.msra.gmra.mxu0 %vm196_vm1, %v1876_v8  ;;  %1484 = vmatmul.msk.f32.vlgmr.msra.gmra.mxu1 %vm196_vm1, %v1876_v8 }
  0x72   : > { %v659_v26 = vld.sshfl [vmem:[#allocation1] sm:$0xff pattern:$0x75316420]  ;;  %v660_v27 = vld.sshfl [vmem:[#allocation1 + $0x8] sm:$0xff pattern:$0x75316420] }
  0x73   : > { %1485 = vmatpush.msk.msra.mxu2 %vm200_vm0, %v659_v26  ;;  %1487 = vmatpush.msk.msra.mxu3 %vm200_vm0, %v660_v27  ;;  %708 = vst [vmem:[#allocation1] ss:$2 sm:$0xff] %v1489_v25 }
  0x74   : > { %1486 = vmatmul.msk.f32.vlgmr.msra.gmra.mxu2 %vm196_vm1, %v1865_v5  ;;  %1488 = vmatmul.msk.f32.vlgmr.msra.gmra.mxu3 %vm196_vm1, %v1865_v5 }
  0x7a   : > { %v709_v28 = vld.sshfl [vmem:[#allocation1] sm:$0xff pattern:$0x75316420]  ;;  %v710_v29 = vld.sshfl [vmem:[#allocation1 + $0x8] sm:$0xff pattern:$0x75316420] }
  0x7b   : > { %763 = vst [vmem:[#allocation1] ss:$2 sm:$0xff] %v1472_v18  ;;  %1490 = vmatpush.msk.msrb.mxu0 %vm200_vm0, %v709_v28  ;;  %1492 = vmatpush.msk.msrb.mxu1 %vm200_vm0, %v710_v29 }
  0x7c   : > { %1491 = vmatmul.msk.f32.vlgmr.msrb.gmra.mxu0 %vm196_vm1, %v1854_v2  ;;  %1493 = vmatmul.msk.f32.vlgmr.msrb.gmra.mxu1 %vm196_vm1, %v1854_v2 }
  0x82   : > { %v764_v30 = vld.sshfl [vmem:[#allocation1] sm:$0xff pattern:$0x75316420]  ;;  %v765_v31 = vld.sshfl [vmem:[#allocation1 + $0x8] sm:$0xff pattern:$0x75316420] }
  0x83   : > { %1498 = vmatpush.msk.msrb.mxu2 %vm200_vm0, %v764_v30  ;;  %1500 = vmatpush.msk.msrb.mxu3 %vm200_vm0, %v765_v31  ;;  %811 = vst [vmem:[#allocation1] ss:$2 sm:$0xff] %v1489_v25 }
  0x84   : > { %1499 = vmatmul.msk.f32.vlgmr.msrb.gmra.mxu2 %vm196_vm1, %v1876_v8  ;;  %1501 = vmatmul.msk.f32.vlgmr.msrb.gmra.mxu3 %vm196_vm1, %v1876_v8 }
  0x8a   : > { %v812_v33 = vld.sshfl [vmem:[#allocation1] sm:$0xff pattern:$0x75316420]  ;;  %v813_v34 = vld.sshfl [vmem:[#allocation1 + $0x8] sm:$0xff pattern:$0x75316420] }
  0x8b   : > { %861 = vst [vmem:[#allocation1] ss:$2 sm:$0xff] %v1506_v32  ;;  %1502 = vmatpush.msk.msra.mxu0 %vm200_vm0, %v812_v33  ;;  %1504 = vmatpush.msk.msra.mxu1 %vm200_vm0, %v813_v34 }
  0x8c   : > { %1503 = vmatmul.msk.f32.vlgmr.msra.gmra.mxu0 %vm196_vm1, %v1865_v5  ;;  %1505 = vmatmul.msk.f32.vlgmr.msra.gmra.mxu1 %vm196_vm1, %v1865_v5 }
  0x92   : > { %v862_v35 = vld.sshfl [vmem:[#allocation1] sm:$0xff pattern:$0x75316420]  ;;  %v863_v36 = vld.sshfl [vmem:[#allocation1 + $0x8] sm:$0xff pattern:$0x75316420] }
  0x93   : > { %1507 = vmatpush.msk.msra.mxu2 %vm200_vm0, %v862_v35  ;;  %1509 = vmatpush.msk.msra.mxu3 %vm200_vm0, %v863_v36  ;;  %916 = vst [vmem:[#allocation1] ss:$2 sm:$0xff] %v1489_v25 }
  0x94   : > { %1508 = vmatmul.msk.f32.vlgmr.msra.gmra.mxu2 %vm196_vm1, %v1854_v2  ;;  %1510 = vmatmul.msk.f32.vlgmr.msra.gmra.mxu3 %vm196_vm1, %v1854_v2 }
  0x9a   : > { %v917_v37 = vld.sshfl [vmem:[#allocation1] sm:$0xff pattern:$0x75316420]  ;;  %v918_v38 = vld.sshfl [vmem:[#allocation1 + $0x8] sm:$0xff pattern:$0x75316420] }
  0x9b   : > { %964 = vst [vmem:[#allocation1] ss:$2 sm:$0xff] %v1506_v32  ;;  %1515 = vmatpush.msk.msrb.mxu0 %vm200_vm0, %v917_v37  ;;  %1517 = vmatpush.msk.msrb.mxu1 %vm200_vm0, %v918_v38 }
  0x9c   : > { %1516 = vmatmul.msk.f32.vlgmr.msrb.gmra.mxu0 %vm196_vm1, %v1876_v8  ;;  %1518 = vmatmul.msk.f32.vlgmr.msrb.gmra.mxu1 %vm196_vm1, %v1876_v8 }
  0xa2   : > { %v965_v40 = vld.sshfl [vmem:[#allocation1] sm:$0xff pattern:$0x75316420]  ;;  %v966_v41 = vld.sshfl [vmem:[#allocation1 + $0x8] sm:$0xff pattern:$0x75316420] }
  0xa3   : > { %1519 = vmatpush.msk.msrb.mxu2 %vm200_vm0, %v965_v40  ;;  %1521 = vmatpush.msk.msrb.mxu3 %vm200_vm0, %v966_v41  ;;  %1014 = vst [vmem:[#allocation1] ss:$2 sm:$0xff] %v1523_v39 }
  0xa4   : > { %1520 = vmatmul.msk.f32.vlgmr.msrb.gmra.mxu2 %vm196_vm1, %v1865_v5  ;;  %1522 = vmatmul.msk.f32.vlgmr.msrb.gmra.mxu3 %vm196_vm1, %v1865_v5 }
  0xa9   : > { %v222_v46 = vpop.f32.mrf.mxu0  ;;  %v242_v47 = vpop.f32.mrf.mxu1 }
  0xaa   : > { %v1015_v42 = vld.sshfl [vmem:[#allocation1] sm:$0xff pattern:$0x75316420]  ;;  %v1016_v43 = vld.sshfl [vmem:[#allocation1 + $0x8] sm:$0xff pattern:$0x75316420] }
  0xab   : > { %1069 = vst [vmem:[#allocation1] ss:$2 sm:$0xff] %v1506_v32  ;;  %1524 = vmatpush.msk.msra.mxu0 %vm200_vm0, %v1015_v42  ;;  %1526 = vmatpush.msk.msra.mxu1 %vm200_vm0, %v1016_v43 }
  0xac   : > { %1525 = vmatmul.msk.f32.vlgmr.msra.gmra.mxu0 %vm196_vm1, %v1854_v2  ;;  %1527 = vmatmul.msk.f32.vlgmr.msra.gmra.mxu1 %vm196_vm1, %v1854_v2 }
  0xb2   : > { %v1070_v44 = vld.sshfl [vmem:[#allocation1] sm:$0xff pattern:$0x75316420]  ;;  %v1071_v45 = vld.sshfl [vmem:[#allocation1 + $0x8] sm:$0xff pattern:$0x75316420] }
  0xb3   : > { %1532 = vmatpush.msk.msra.mxu2 %vm200_vm0, %v1070_v44  ;;  %1534 = vmatpush.msk.msra.mxu3 %vm200_vm0, %v1071_v45  ;;  %1117 = vst [vmem:[#allocation1] ss:$2 sm:$0xff] %v1523_v39 }
  0xb4   : > { %1533 = vmatmul.msk.f32.vlgmr.msra.gmra.mxu2 %vm196_vm1, %v1876_v8  ;;  %1535 = vmatmul.msk.f32.vlgmr.msra.gmra.mxu3 %vm196_vm1, %v1876_v8 }
  0xb7   : > { %v273_v48 = vpop.f32.mrf.mxu2  ;;  %v293_v49 = vpop.f32.mrf.mxu3 }
  0xb8   : > { %v274_v51 = vadd.f32 %v273_v48, %v222_v46  ;;  %v294_v52 = vadd.f32 %v293_v49, %v242_v47 }
  0xb9   : > { %v328_v55 = vpop.f32.mrf.mxu0  ;;  %v348_v56 = vpop.f32.mrf.mxu1 }
  0xba   : > { %v1118_v53 = vld.sshfl [vmem:[#allocation1] sm:$0xff pattern:$0x75316420]  ;;  %v1119_v54 = vld.sshfl [vmem:[#allocation1 + $0x8] sm:$0xff pattern:$0x75316420]  ;;  %296 = vst [vmem:[%s1981_s30] sm:$0xff] %v274_v51 }
  0xbb   : > { %1167 = vst [vmem:[#allocation1] ss:$2 sm:$0xff] %v1540_v50  ;;  %1536 = vmatpush.msk.msrb.mxu0 %vm200_vm0, %v1118_v53  ;;  %1538 = vmatpush.msk.msrb.mxu1 %vm200_vm0, %v1119_v54 }
  0xbc   : > { %1537 = vmatmul.msk.f32.vlgmr.msrb.gmra.mxu0 %vm196_vm1, %v1865_v5  ;;  %1539 = vmatmul.msk.f32.vlgmr.msrb.gmra.mxu1 %vm196_vm1, %v1865_v5  ;;  %297 = vst [vmem:[%s1981_s30 + $0x8] sm:$0xff] %v294_v52 }
  0xc2   : > { %v1168_v57 = vld.sshfl [vmem:[#allocation1] sm:$0xff pattern:$0x75316420]  ;;  %v1169_v58 = vld.sshfl [vmem:[#allocation1 + $0x8] sm:$0xff pattern:$0x75316420] }
  0xc3   : > { %1541 = vmatpush.msk.msrb.mxu2 %vm200_vm0, %v1168_v57  ;;  %1543 = vmatpush.msk.msrb.mxu3 %vm200_vm0, %v1169_v58  ;;  %1222 = vst [vmem:[#allocation1] ss:$2 sm:$0xff] %v1523_v39 }
  0xc4   : > { %1542 = vmatmul.msk.f32.vlgmr.msrb.gmra.mxu2 %vm196_vm1, %v1854_v2  ;;  %1544 = vmatmul.msk.f32.vlgmr.msrb.gmra.mxu3 %vm196_vm1, %v1854_v2 }
  0xc7   : > { %v376_v59 = vpop.f32.mrf.mxu2  ;;  %v396_v60 = vpop.f32.mrf.mxu3 }
  0xc8   : > { %v377_v61 = vadd.f32 %v376_v59, %v328_v55  ;;  %v397_v62 = vadd.f32 %v396_v60, %v348_v56 }
  0xc9   : > { %v426_v63 = vpop.f32.mrf.mxu0  ;;  %v446_v0 = vpop.f32.mrf.mxu1 }
  0xca   : > { %v1223_v1 = vld.sshfl [vmem:[#allocation1] sm:$0xff pattern:$0x75316420]  ;;  %v1224_v3 = vld.sshfl [vmem:[#allocation1 + $0x8] sm:$0xff pattern:$0x75316420]  ;;  %v449_v4 = vadd.f32 %v426_v63, %v377_v61  ;;  %v450_v6 = vadd.f32 %v446_v0, %v397_v62 }
  0xcb   : > { %1270 = vst [vmem:[#allocation1] ss:$2 sm:$0xff] %v1540_v50  ;;  %1549 = vmatpush.msk.msra.mxu0 %vm200_vm0, %v1223_v1  ;;  %1551 = vmatpush.msk.msra.mxu1 %vm200_vm0, %v1224_v3 }
  0xcc   : > { %1550 = vmatmul.msk.f32.vlgmr.msra.gmra.mxu0 %vm196_vm1, %v1876_v8  ;;  %1552 = vmatmul.msk.f32.vlgmr.msra.gmra.mxu1 %vm196_vm1, %v1876_v8  ;;  %1460 = vst [vmem:[%s1981_s30 + $0x10] sm:$0xff] %v449_v4 }
  0xcd   : > { %1461 = vst [vmem:[%s1981_s30 + $0x18] sm:$0xff] %v450_v6 }
  0xd2   : > { %v1271_v2 = vld.sshfl [vmem:[#allocation1] sm:$0xff pattern:$0x75316420]  ;;  %v1272_v7 = vld.sshfl [vmem:[#allocation1 + $0x8] sm:$0xff pattern:$0x75316420] }
  0xd3   : > { %1553 = vmatpush.msk.msra.mxu2 %vm200_vm0, %v1271_v2  ;;  %1555 = vmatpush.msk.msra.mxu3 %vm200_vm0, %v1272_v7 }
  0xd4   : > { %1554 = vmatmul.msk.f32.vlgmr.msra.gmra.mxu2 %vm196_vm1, %v1865_v5  ;;  %1556 = vmatmul.msk.f32.vlgmr.msra.gmra.mxu3 %vm196_vm1, %v1865_v5 }
  0xd7   : > { %v481_v9 = vpop.f32.mrf.mxu2  ;;  %v501_v10 = vpop.f32.mrf.mxu3 }
  0xd9   : > { %v529_v11 = vpop.f32.mrf.mxu0  ;;  %v549_v8 = vpop.f32.mrf.mxu1 }
  0xda   : > { %v530_v12 = vadd.f32 %v529_v11, %v481_v9  ;;  %v550_v13 = vadd.f32 %v549_v8, %v501_v10 }
  0xe7   : > { %v579_v14 = vpop.f32.mrf.mxu2  ;;  %v599_v15 = vpop.f32.mrf.mxu3 }
  0xe8   : > { %v602_v16 = vadd.f32 %v579_v14, %v530_v12  ;;  %v603_v17 = vadd.f32 %v599_v15, %v550_v13 }
  0xe9   : > { %v634_v18 = vpop.f32.mrf.mxu0  ;;  %v654_v19 = vpop.f32.mrf.mxu1 }
  0xea   : > { %1477 = vst [vmem:[%s1981_s30 + $0x20] sm:$0xff] %v602_v16 }
  0xeb   : > { %1478 = vst [vmem:[%s1981_s30 + $0x28] sm:$0xff] %v603_v17 }
  0xf7   : > { %v682_v20 = vpop.f32.mrf.mxu2  ;;  %v702_v21 = vpop.f32.mrf.mxu3 }
  0xf8   : > { %v683_v22 = vadd.f32 %v682_v20, %v634_v18  ;;  %v703_v5 = vadd.f32 %v702_v21, %v654_v19 }
  0xf9   : > { %v732_v23 = vpop.f32.mrf.mxu0  ;;  %v752_v24 = vpop.f32.mrf.mxu1 }
  0xfa   : > { %v755_v25 = vadd.f32 %v732_v23, %v683_v22  ;;  %v756_v26 = vadd.f32 %v752_v24, %v703_v5 }
  0xfc   : > { %1494 = vst [vmem:[%s1981_s30 + $0x30] sm:$0xff] %v755_v25 }
  0xfd   : > { %1495 = vst [vmem:[%s1981_s30 + $0x38] sm:$0xff] %v756_v26 }
 0x107   : > { %v787_v27 = vpop.f32.mrf.mxu2  ;;  %v807_v28 = vpop.f32.mrf.mxu3 }
 0x109   : > { %v835_v29 = vpop.f32.mrf.mxu0  ;;  %v855_v30 = vpop.f32.mrf.mxu1 }
 0x10a   : > { %v836_v31 = vadd.f32 %v835_v29, %v787_v27  ;;  %v856_v32 = vadd.f32 %v855_v30, %v807_v28 }
 0x117   : > { %v885_v33 = vpop.f32.mrf.mxu2  ;;  %v905_v34 = vpop.f32.mrf.mxu3 }
 0x118   : > { %v908_v35 = vadd.f32 %v885_v33, %v836_v31  ;;  %v909_v36 = vadd.f32 %v905_v34, %v856_v32 }
 0x119   : > { %v940_v37 = vpop.f32.mrf.mxu0  ;;  %v960_v38 = vpop.f32.mrf.mxu1 }
 0x11a   : > { %1511 = vst [vmem:[%s1981_s30 + $0x40] sm:$0xff] %v908_v35 }
 0x11b   : > { %1512 = vst [vmem:[%s1981_s30 + $0x48] sm:$0xff] %v909_v36 }
 0x127   : > { %v988_v39 = vpop.f32.mrf.mxu2  ;;  %v1008_v40 = vpop.f32.mrf.mxu3 }
 0x128   : > { %v989_v41 = vadd.f32 %v988_v39, %v940_v37  ;;  %v1009_v42 = vadd.f32 %v1008_v40, %v960_v38 }
 0x129   : > { %v1038_v43 = vpop.f32.mrf.mxu0  ;;  %v1058_v44 = vpop.f32.mrf.mxu1 }
 0x12a   : > { %v1061_v45 = vadd.f32 %v1038_v43, %v989_v41  ;;  %v1062_v46 = vadd.f32 %v1058_v44, %v1009_v42 }
 0x12c   : > { %1528 = vst [vmem:[%s1981_s30 + $0x50] sm:$0xff] %v1061_v45 }
 0x12d   : > { %1529 = vst [vmem:[%s1981_s30 + $0x58] sm:$0xff] %v1062_v46 }
 0x137   : > { %v1093_v47 = vpop.f32.mrf.mxu2  ;;  %v1113_v48 = vpop.f32.mrf.mxu3 }
 0x139   : > { %v1141_v49 = vpop.f32.mrf.mxu0  ;;  %v1161_v50 = vpop.f32.mrf.mxu1 }
 0x13a   : > { %v1142_v51 = vadd.f32 %v1141_v49, %v1093_v47  ;;  %v1162_v52 = vadd.f32 %v1161_v50, %v1113_v48 }
 0x147   : > { %v1191_v53 = vpop.f32.mrf.mxu2  ;;  %v1211_v54 = vpop.f32.mrf.mxu3 }
 0x148   : > { %v1214_v55 = vadd.f32 %v1191_v53, %v1142_v51  ;;  %v1215_v56 = vadd.f32 %v1211_v54, %v1162_v52 }
 0x149   : > { %v1246_v57 = vpop.f32.mrf.mxu0  ;;  %v1266_v58 = vpop.f32.mrf.mxu1 }
 0x14a   : > { %1545 = vst [vmem:[%s1981_s30 + $0x60] sm:$0xff] %v1214_v55 }
 0x14b   : > { %1546 = vst [vmem:[%s1981_s30 + $0x68] sm:$0xff] %v1215_v56 }
 0x157   : > { %v1294_v59 = vpop.f32.mrf.mxu2  ;;  %v1314_v60 = vpop.f32.mrf.mxu3 }
 0x158   : > { %v1295_v61 = vadd.f32 %v1294_v59, %v1246_v57  ;;  %v1315_v62 = vadd.f32 %v1314_v60, %v1266_v58 }
 0x15a   : > { %1557 = vst [vmem:[%s1981_s30 + $0x70] sm:$0xff] %v1295_v61 }
 0x15b   : > { %1558 = vst [vmem:[%s1981_s30 + $0x78] sm:$0xff] %v1315_v62 }
 0x15c   : > { %1689 = shalt.err (!%p1686_p13)
}
 0x15d   : > { %s1748_s15 = smov 256   ;;  %s1749_s27 = smov 16  }
 0x15e   : > { %1568 = dma.vmem_to_hbm [thread:$0]  (%p1816_p9), %s1336_s7, 2048, %s1338_s8, %s1321_s16, %s1748_s15, %s1748_s15, %s1749_s27  }
 0x15f PF: > { %s1352_s28 = sand.u32 1, %s1724_s9   ;;  %p1575_p0 = pnand %p1428_p12, %p1823_p11 }
 0x160   : > { %s1353_s29 = scalar_lea.sflag [#allocation4], %s1352_s28 }
 0x161   : > { %p1576_p1 = pneg %p1575_p0 }
 0x163   : > { %1719 = dma.done.wait (%p1576_p1), %s1353_s29, 2048  }
 0x164   : > { %1721 = vsyncadd (%p1576_p1), %s1353_s29, 4294965248  ;;  %s18_s14 = sadd.s32 1, %s1744_s14   ;;  %s2069_s9 = smov %s1728_s10 }
 0x165   : > { %p15_p2 = scmp.ge.s32.totalorder %s18_s14, 4   ;;  %s2070_s10 = smov %s1732_s11 }
 0x166   : > { %s2071_s11 = smov %s1821_s23  ;;  %s2072_s12 = smov %s1740_s13 }
 0x167   : > { %s2073_s13 = smov %s2075_s17  ;;  %17 = sbr.rel (!%p15_p2) target bundleno = 6 (0x6), region = 89 }
 0x16c   :  { %1359 = vsyncpa [#allocation3], 1 }
 0x16d   :  { %1361 = vsyncpa [#allocation3 + $0x1], 1 }
 0x16e   :  { %1362 = vsyncpa [#allocation4], 1 }
 0x16f   :  { %1364 = vsyncpa [#allocation4 + $0x1], 1 }

</bundles_post_ra>
